<compile_context>
chip_gen: v7x
topology: tpu7x:2x2x1
jax: 0.10.0
libtpu: 0.0.40
codegen_flags: <defaults>
</compile_context>

<pallas_src>
import jax
import jax.numpy as jnp
from jax import lax
from jax.experimental import pallas as pl
from jax.experimental.pallas import tpu as pltpu

_LANE = 128
_UNROLL_C_MAX = 32          # fully unroll channel loops up to this many channels


def _sublane_multiple(dtype):
    # Native sublane packing: 8 rows for 32-bit, 16 for 16-bit, 32 for 8-bit.
    return max(8, 32 // jnp.dtype(dtype).itemsize)


def _sse3d_kernel(w_ref, b_ref, x_ref, o_ref):
    # w_ref: (C,) f32 in SMEM, b_ref: (1,) f32 in SMEM
    # x_ref / o_ref: (1, C, rt, 128) VMEM blocks (spatial on sublanes + lanes).
    C = x_ref.shape[1]

    # ---- Spatial squeeze (1x1x1 conv over channels), f32 accumulation ----
    init = x_ref[0, 0].astype(jnp.float32) * w_ref[0]
    if C <= _UNROLL_C_MAX:
        acc = init
        for c in range(1, C):
            acc = acc + x_ref[0, c].astype(jnp.float32) * w_ref[c]
    else:
        def squeeze_body(c, a):
            return a + x_ref[0, c].astype(jnp.float32) * w_ref[c]
        acc = lax.fori_loop(1, C, squeeze_body, init, unroll=4)

    gate = jax.nn.sigmoid(acc + b_ref[0])                       # (rt, 128) f32
    if o_ref.dtype != jnp.float32:
        # bf16/fp16 excitation path: keep the f32 sigmoid, but do the broadcast
        # multiply in the native dtype (halves VALU work + vreg pressure).
        gate = gate.astype(o_ref.dtype)

    # ---- Channel excitation: broadcast the spatial gate over channels ----
    if C <= _UNROLL_C_MAX:
        for c in range(C):
            o_ref[0, c] = (x_ref[0, c] * gate).astype(o_ref.dtype)
    else:
        def excite_body(c, carry):
            o_ref[0, c] = (x_ref[0, c] * gate).astype(o_ref.dtype)
            return carry
        lax.fori_loop(0, C, excite_body, 0, unroll=4)


def spatial_se_layer_3d(x, conv_weight, conv_bias, *, target_tile_bytes=8 << 20):
    """SpatialSELayer3D forward (default `weights=None` path of the module).

    x: (B, C, D, H, W); conv_weight: (1, C, 1, 1, 1); conv_bias: (1,).
    The few-shot `weights` path is just a different (1, C, 1, 1, 1) weight and can
    be passed via `conv_weight`.
    """
    B, C, D, H, W = x.shape
    S = D * H * W
    itemsize = jnp.dtype(x.dtype).itemsize
    sub = _sublane_multiple(x.dtype)

    # Spatial axis -> (rows, 128): lanes get 128, sublanes get rows.
    R = pl.cdiv(S, _LANE)
    s_pad = R * _LANE

    # Rows per block: aim for ~target_tile_bytes of input per grid step so the
    # DMA time dwarfs the ~0.35us fixed per-step pipeline overhead.  Keep rt a
    # multiple of the dtype's sublane packing unless one block covers all rows.
    rows_for_target = target_tile_bytes // (C * _LANE * itemsize)
    if rows_for_target >= R:
        rt = R                                   # full-dim block (always legal)
    else:
        rt = max(sub, (rows_for_target // sub) * sub)
    rt = int(rt)
    grid_rows = pl.cdiv(R, rt)                   # ragged last block is masked

    x2 = x.reshape(B, C, S)
    if s_pad != S:
        # Only when S is not a multiple of 128 (extra HBM pass; padded tail
        # yields zero outputs which are sliced off below).
        x2 = jnp.pad(x2, ((0, 0), (0, 0), (0, s_pad - S)))
    x4 = x2.reshape(B, C, R, _LANE)              # zero-copy when s_pad == S

    w1 = conv_weight.reshape(C).astype(jnp.float32)
    b1 = conv_bias.reshape(1).astype(jnp.float32)

    # NOTE: per-step VMEM = 2x(in+out) blocks ~= 4 * target_tile_bytes = 32 MiB,
    # which fits inside the 48 MiB scoped limit on every generation (v7x has
    # only 64 MiB physical VMEM, v5e/v6e have 128 MiB).
    out = pl.pallas_call(
        _sse3d_kernel,
        out_shape=jax.ShapeDtypeStruct((B, C, R, _LANE), x.dtype),
        grid_spec=pltpu.PrefetchScalarGridSpec(
            num_scalar_prefetch=0,
            grid=(B, grid_rows),
            in_specs=[
                pl.BlockSpec(memory_space=pltpu.MemorySpace.SMEM),   # weight (C,)
                pl.BlockSpec(memory_space=pltpu.MemorySpace.SMEM),   # bias (1,)
                pl.BlockSpec((1, C, rt, _LANE), lambda b, r: (b, 0, r, 0)),
            ],
            out_specs=pl.BlockSpec((1, C, rt, _LANE), lambda b, r: (b, 0, r, 0)),
        ),
        compiler_params=pltpu.CompilerParams(
            dimension_semantics=("parallel", "parallel"),
            vmem_limit_bytes=48 << 20),
    )(w1, b1, x4)

    out = out.reshape(B, C, s_pad)
    if s_pad != S:
        out = out[:, :, :S]
    return out.reshape(B, C, D, H, W)


def _reference(x, conv_weight, conv_bias):
    B, C, D, H, W = x.shape
    w = conv_weight.reshape(1, C, 1, 1, 1).astype(jnp.float32)
    squeeze = jnp.sum(x.astype(jnp.float32) * w, axis=1, keepdims=True) \
        + conv_bias.reshape(1, 1, 1, 1, 1).astype(jnp.float32)
    return (x.astype(jnp.float32) * jax.nn.sigmoid(squeeze)).astype(x.dtype)


if __name__ == "__main__":
    key = jax.random.PRNGKey(0)
    kx, kw, kb = jax.random.split(key, 3)

    B, C, D, H, W = 2, 4, 8, 8, 8  # S = 512 (multiple of 128 -> zero-copy path)
    x = jax.random.normal(kx, (B, C, D, H, W), dtype=jnp.float32)

    # Deterministic Conv3d(C -> 1, kernel=1) parameters, mimicking PyTorch's
    # uniform(-1/sqrt(fan_in), 1/sqrt(fan_in)) init.
    fan_in = C
    bound = 1.0 / (fan_in ** 0.5)
    conv_weight = jax.random.uniform(kw, (1, C, 1, 1, 1), jnp.float32, -bound, bound)
    conv_bias = jax.random.uniform(kb, (1,), jnp.float32, -bound, bound)

    out = spatial_se_layer_3d(x, conv_weight, conv_bias)
    out = jax.block_until_ready(out)

    ref = _reference(x, conv_weight, conv_bias)
    assert out.shape == (B, C, D, H, W)
    assert jnp.allclose(out, ref, atol=1e-5, rtol=1e-5), "mismatch vs reference"
    print("KERNEL_OK")
</pallas_src>

<mosaic_0001>
module attributes {stable_mosaic.version = 11 : i64} {
  func.func @_sse3d_kernel(%arg0: i32, %arg1: i32, %arg2: memref<4xf32, #tpu.memory_space<smem>>, %arg3: memref<1xf32, #tpu.memory_space<smem>>, %arg4: memref<1x4x4x128xf32, #tpu.memory_space<vmem>>, %arg5: memref<1x4x4x128xf32, #tpu.memory_space<vmem>>) attributes {dimension_semantics = [#tpu.dimension_semantics<parallel>, #tpu.dimension_semantics<parallel>], iteration_bounds = array<i64: 2, 1>, scalar_prefetch = 0 : i64, scratch_operands = 0 : i64, tpu.core_type = #tpu.core_type<tc>, window_params = [{transform_indices = @transform_0, window_bounds = array<i64: 4>}, {transform_indices = @transform_1, window_bounds = array<i64: 1>}, {transform_indices = @transform_2, window_bounds = array<i64: 1, 4, 4, 128>}, {transform_indices = @transform_3, window_bounds = array<i64: 1, 4, 4, 128>}]} {
    %c0 = arith.constant 0 : index
    %c0_0 = arith.constant 0 : index
    %c0_1 = arith.constant 0 : index
    %c0_2 = arith.constant 0 : index
    %0 = vector.load %arg4[%c0, %c0_0, %c0_1, %c0_2] : memref<1x4x4x128xf32, #tpu.memory_space<vmem>>, vector<1x1x4x128xf32>
    %1 = vector.shape_cast %0 : vector<1x1x4x128xf32> to vector<4x128xf32>
    %c0_3 = arith.constant 0 : index
    %2 = memref.load %arg2[%c0_3] : memref<4xf32, #tpu.memory_space<smem>>
    %3 = vector.broadcast %2 : f32 to vector<4x128xf32>
    %4 = arith.mulf %1, %3 : vector<4x128xf32>
    %c0_4 = arith.constant 0 : index
    %c1 = arith.constant 1 : index
    %c0_5 = arith.constant 0 : index
    %c0_6 = arith.constant 0 : index
    %5 = vector.load %arg4[%c0_4, %c1, %c0_5, %c0_6] : memref<1x4x4x128xf32, #tpu.memory_space<vmem>>, vector<1x1x4x128xf32>
    %6 = vector.shape_cast %5 : vector<1x1x4x128xf32> to vector<4x128xf32>
    %c1_7 = arith.constant 1 : index
    %7 = memref.load %arg2[%c1_7] : memref<4xf32, #tpu.memory_space<smem>>
    %8 = vector.broadcast %7 : f32 to vector<4x128xf32>
    %9 = arith.mulf %6, %8 : vector<4x128xf32>
    %10 = arith.addf %4, %9 : vector<4x128xf32>
    %c0_8 = arith.constant 0 : index
    %c2 = arith.constant 2 : index
    %c0_9 = arith.constant 0 : index
    %c0_10 = arith.constant 0 : index
    %11 = vector.load %arg4[%c0_8, %c2, %c0_9, %c0_10] : memref<1x4x4x128xf32, #tpu.memory_space<vmem>>, vector<1x1x4x128xf32>
    %12 = vector.shape_cast %11 : vector<1x1x4x128xf32> to vector<4x128xf32>
    %c2_11 = arith.constant 2 : index
    %13 = memref.load %arg2[%c2_11] : memref<4xf32, #tpu.memory_space<smem>>
    %14 = vector.broadcast %13 : f32 to vector<4x128xf32>
    %15 = arith.mulf %12, %14 : vector<4x128xf32>
    %16 = arith.addf %10, %15 : vector<4x128xf32>
    %c0_12 = arith.constant 0 : index
    %c3 = arith.constant 3 : index
    %c0_13 = arith.constant 0 : index
    %c0_14 = arith.constant 0 : index
    %17 = vector.load %arg4[%c0_12, %c3, %c0_13, %c0_14] : memref<1x4x4x128xf32, #tpu.memory_space<vmem>>, vector<1x1x4x128xf32>
    %18 = vector.shape_cast %17 : vector<1x1x4x128xf32> to vector<4x128xf32>
    %c3_15 = arith.constant 3 : index
    %19 = memref.load %arg2[%c3_15] : memref<4xf32, #tpu.memory_space<smem>>
    %20 = vector.broadcast %19 : f32 to vector<4x128xf32>
    %21 = arith.mulf %18, %20 : vector<4x128xf32>
    %22 = arith.addf %16, %21 : vector<4x128xf32>
    %c0_16 = arith.constant 0 : index
    %23 = memref.load %arg3[%c0_16] : memref<1xf32, #tpu.memory_space<smem>>
    %24 = vector.broadcast %23 : f32 to vector<4x128xf32>
    %25 = arith.addf %22, %24 : vector<4x128xf32>
    %26 = arith.negf %25 : vector<4x128xf32>
    %27 = math.exp %26 : vector<4x128xf32>
    %cst = arith.constant 1.000000e+00 : f32
    %28 = vector.broadcast %cst : f32 to vector<4x128xf32>
    %29 = arith.addf %28, %27 : vector<4x128xf32>
    %30 = arith.divf %28, %29 : vector<4x128xf32>
    %c0_17 = arith.constant 0 : index
    %c0_18 = arith.constant 0 : index
    %c0_19 = arith.constant 0 : index
    %c0_20 = arith.constant 0 : index
    %31 = vector.load %arg4[%c0_17, %c0_18, %c0_19, %c0_20] : memref<1x4x4x128xf32, #tpu.memory_space<vmem>>, vector<1x1x4x128xf32>
    %32 = vector.shape_cast %31 : vector<1x1x4x128xf32> to vector<4x128xf32>
    %33 = arith.mulf %32, %30 : vector<4x128xf32>
    %c0_21 = arith.constant 0 : index
    %c0_22 = arith.constant 0 : index
    %c0_23 = arith.constant 0 : index
    %c0_24 = arith.constant 0 : index
    %34 = vector.load %arg5[%c0_21, %c0_22, %c0_23, %c0_24] : memref<1x4x4x128xf32, #tpu.memory_space<vmem>>, vector<1x1x4x128xf32>
    %35 = vector.shape_cast %34 : vector<1x1x4x128xf32> to vector<4x128xf32>
    %36 = vector.shape_cast %33 : vector<4x128xf32> to vector<1x1x4x128xf32>
    tpu.vector_store %arg5[%c0_21, %c0_22, %c0_23, %c0_24], %36 {strides = array<i32>} : memref<1x4x4x128xf32, #tpu.memory_space<vmem>>, vector<1x1x4x128xf32>,
    %c0_25 = arith.constant 0 : index
    %c1_26 = arith.constant 1 : index
    %c0_27 = arith.constant 0 : index
    %c0_28 = arith.constant 0 : index
    %37 = vector.load %arg4[%c0_25, %c1_26, %c0_27, %c0_28] : memref<1x4x4x128xf32, #tpu.memory_space<vmem>>, vector<1x1x4x128xf32>
    %38 = vector.shape_cast %37 : vector<1x1x4x128xf32> to vector<4x128xf32>
    %39 = arith.mulf %38, %30 : vector<4x128xf32>
    %c0_29 = arith.constant 0 : index
    %c1_30 = arith.constant 1 : index
    %c0_31 = arith.constant 0 : index
    %c0_32 = arith.constant 0 : index
    %40 = vector.load %arg5[%c0_29, %c1_30, %c0_31, %c0_32] : memref<1x4x4x128xf32, #tpu.memory_space<vmem>>, vector<1x1x4x128xf32>
    %41 = vector.shape_cast %40 : vector<1x1x4x128xf32> to vector<4x128xf32>
    %42 = vector.shape_cast %39 : vector<4x128xf32> to vector<1x1x4x128xf32>
    tpu.vector_store %arg5[%c0_29, %c1_30, %c0_31, %c0_32], %42 {strides = array<i32>} : memref<1x4x4x128xf32, #tpu.memory_space<vmem>>, vector<1x1x4x128xf32>,
    %c0_33 = arith.constant 0 : index
    %c2_34 = arith.constant 2 : index
    %c0_35 = arith.constant 0 : index
    %c0_36 = arith.constant 0 : index
    %43 = vector.load %arg4[%c0_33, %c2_34, %c0_35, %c0_36] : memref<1x4x4x128xf32, #tpu.memory_space<vmem>>, vector<1x1x4x128xf32>
    %44 = vector.shape_cast %43 : vector<1x1x4x128xf32> to vector<4x128xf32>
    %45 = arith.mulf %44, %30 : vector<4x128xf32>
    %c0_37 = arith.constant 0 : index
    %c2_38 = arith.constant 2 : index
    %c0_39 = arith.constant 0 : index
    %c0_40 = arith.constant 0 : index
    %46 = vector.load %arg5[%c0_37, %c2_38, %c0_39, %c0_40] : memref<1x4x4x128xf32, #tpu.memory_space<vmem>>, vector<1x1x4x128xf32>
    %47 = vector.shape_cast %46 : vector<1x1x4x128xf32> to vector<4x128xf32>
    %48 = vector.shape_cast %45 : vector<4x128xf32> to vector<1x1x4x128xf32>
    tpu.vector_store %arg5[%c0_37, %c2_38, %c0_39, %c0_40], %48 {strides = array<i32>} : memref<1x4x4x128xf32, #tpu.memory_space<vmem>>, vector<1x1x4x128xf32>,
    %c0_41 = arith.constant 0 : index
    %c3_42 = arith.constant 3 : index
    %c0_43 = arith.constant 0 : index
    %c0_44 = arith.constant 0 : index
    %49 = vector.load %arg4[%c0_41, %c3_42, %c0_43, %c0_44] : memref<1x4x4x128xf32, #tpu.memory_space<vmem>>, vector<1x1x4x128xf32>
    %50 = vector.shape_cast %49 : vector<1x1x4x128xf32> to vector<4x128xf32>
    %51 = arith.mulf %50, %30 : vector<4x128xf32>
    %c0_45 = arith.constant 0 : index
    %c3_46 = arith.constant 3 : index
    %c0_47 = arith.constant 0 : index
    %c0_48 = arith.constant 0 : index
    %52 = vector.load %arg5[%c0_45, %c3_46, %c0_47, %c0_48] : memref<1x4x4x128xf32, #tpu.memory_space<vmem>>, vector<1x1x4x128xf32>
    %53 = vector.shape_cast %52 : vector<1x1x4x128xf32> to vector<4x128xf32>
    %54 = vector.shape_cast %51 : vector<4x128xf32> to vector<1x1x4x128xf32>
    tpu.vector_store %arg5[%c0_45, %c3_46, %c0_47, %c0_48], %54 {strides = array<i32>} : memref<1x4x4x128xf32, #tpu.memory_space<vmem>>, vector<1x1x4x128xf32>,
    return
  }
  func.func @transform_0(%arg0: i32, %arg1: i32) -> i32 {
    %c0_i32 = arith.constant 0 : i32
    %c0_i32_0 = arith.constant 0 : i32
    return %c0_i32 : i32
  }
  func.func @transform_1(%arg0: i32, %arg1: i32) -> i32 {
    %c0_i32 = arith.constant 0 : i32
    %c0_i32_0 = arith.constant 0 : i32
    return %c0_i32 : i32
  }
  func.func @transform_2(%arg0: i32, %arg1: i32) -> (i32, i32, i32, i32) {
    %c0_i32 = arith.constant 0 : i32
    %c0_i32_0 = arith.constant 0 : i32
    %c0_i32_1 = arith.constant 0 : i32
    return %arg0, %c0_i32, %arg1, %c0_i32_0 : i32, i32, i32, i32
  }
  func.func @transform_3(%arg0: i32, %arg1: i32) -> (i32, i32, i32, i32) {
    %c0_i32 = arith.constant 0 : i32
    %c0_i32_0 = arith.constant 0 : i32
    %c0_i32_1 = arith.constant 0 : i32
    return %arg0, %c0_i32, %arg1, %c0_i32_0 : i32, i32, i32, i32
  }
}

</mosaic_0001>

<bundles_post_ra>
// kernel: tpu_custom_call.1
= control target key start
LH: loop header
LB: loop body
LE: loop exit
PB: predicated region body
PF: predicated region fallthrough
CT: control target
= control target key end

     0   :  { %s879_s0 = inlined_call_operand.vmem [shape: f32[4], index: 0, kind: input, shape index: {}]   ;;  %s880_s1 = inlined_call_operand.<no memory space> [shape: f32[1], index: 1, kind: input, shape index: {}]   ;;  %s881_s2 = inlined_call_operand.hbm [shape: f32[2,4,4,128], index: 2, kind: input, shape index: {}]   ;;  %s882_s3 = inlined_call_operand.hbm [shape: f32[2,4,4,128], index: 3, kind: output, shape index: {}]  }
   0x1   :  { %8 = sst [smem:[#allocation2]] %s880_s1 }
   0x2   :  { %9 = vsyncpa [#allocation6], 0 }
   0x3   :  { %10 = vsyncpa [#allocation4], 0 }
   0x4   :  { %12 = vsyncpa [#allocation4 + $0x1], 0 }
   0x5   :  { %13 = vsyncpa [#allocation5], 0 }
   0x6   :  { %15 = vsyncpa [#allocation5 + $0x1], 0  ;;  %s654_s14 = smov 0   ;;  %s656_s15 = smov 0  }
   0x7   :  { %s658_s16 = smov 0   ;;  %s660_s17 = smov 0  }
   0x8   :  { %s662_s18 = smov 0   ;;  %s664_s19 = smov 0  }
   0x9 LB: > { %s378_s1 = sadd.s32 4294967295, %s622_s19   ;;  %s379_s20 = sadd.s32 4294967294, %s622_s19   ;;  %s622_s19 = sphi %s664_s19, %s21_s19   ;;  %s618_s18 = sphi %s662_s18, %s905_s18   ;;  %s614_s17 = sphi %s660_s17, %s904_s17   ;;  %s610_s16 = sphi %s658_s16, %s903_s16   ;;  %s606_s15 = sphi %s656_s15, %s902_s15   ;;  %s602_s14 = sphi %s654_s14, %s901_s14  }
   0xa   : > { %s84_s21 = sadd.s32 1, %s610_s16  ;;  %p91_p0 = scmp.ne.s32.totalorder %s610_s16, %s606_s15 }
   0xb   : > { %p92_p1 = scmp.eq.s32.totalorder %s622_s19, 0  ;;  %p97_p2 = scmp.ne.s32.totalorder %s606_s15, %s602_s14 }
   0xc   : > { %p692_p3 = scmp.eq.s32.totalorder %s378_s1, 0  ;;  %p123_p4 = scmp.eq.s32.totalorder %s378_s1, 1 }
   0xd   : > { %p696_p5 = por %p92_p1, %p91_p0  ;;  %p129_p6 = scmp.eq.s32.totalorder %s379_s20, 1 }
   0xe   : > { %s887_s22 = scalar_select %p692_p3, 1, 0 }
   0xf   : > { %p702_p7 = por %p692_p3, %p97_p2  ;;  %p706_p8 = por %p123_p4, %p91_p0 }
  0x10   : > { %p710_p9 = por %p129_p6, %p97_p2  ;;  %p380_p10 = scmp.ge.s32.totalorder %s622_s19, 1 }
  0x11   : > { %s889_s24 = scalar_select %p702_p7, 1, 0 }
  0x12   : > { %s890_s25 = scalar_select %p706_p8, 1, 0 }
  0x13   : > { %s891_s26 = scalar_select %p710_p9, 1, 0 }
  0x14   : > { %p136_p11 = scmp.lt.s32.totalorder %s622_s19, 3  ;;  %s149_s29 = sshll.u32 %s879_s0, 4  ;;  %s150_s29 = int_to_ptr.vmem [resolvable:$true] %s149_s29 }
  0x15   : > { %p431_p0 = scmp.lt.s32.totalorder %s622_s19, 2  ;;  %s33_s6 = sadd.s32 1, %s618_s18 }
  0x16   : > { %p719_p12 = pnand %p380_p10, %p136_p11  ;;  %p740_p6 = scmp.ge.s32.totalorder %s33_s6, 2 }
  0x17   : > { %p729_p2 = pnand %p431_p0, %p696_p5  ;;  %s163_s8 = sand.u32 1, %s610_s16  }
  0x18   : > { %p418_p1 = pneg %p719_p12  ;;  %s491_s9 = scalar_lea.vmem %s150_s29, 16 }
  0x19   : > { %p492_p10 = scmp.ne.s32.totalorder %s150_s29, %s491_s9  ;;  %p499_p13 = scmp.lt.s32.totalorder %s150_s29, %s150_s29 }
  0x1a   : > { %p735_p4 = pnand %p418_p1, %p692_p3  ;;  %p500_p9 = scmp.lt.s32.totalorder %s491_s9, %s491_s9 }
  0x1c   : > { %p493_p11 = pneg %p735_p4  ;;  %p501_p8 = por %p500_p9, %p499_p13 }
  0x1e   : > { %p494_p5 = pnand %p493_p11, %p492_p10 }
  0x20   : > { %p495_p0 = pneg %p494_p5 }
  0x22   : > { %p502_p1 = pnand %p501_p8, %p495_p0 }
  0x24   : > { %505 = shalt.err (!%p502_p1)
}
  0x25   : > { %s624_s10 = smov [#allocation3]   ;;  %s907_s6 = smov (%p740_p6, %s33_s6), 0 }
  0x26   : > { %421 = dma.vmem_to_smem (!%p735_p4), %s150_s29, 16, %s624_s10, [#allocation6]  }
  0x27   : > { %s383_s11 = sshll.u32 %s163_s8, 4  ;;  %s79_s12 = ssub.s32 %s618_s18, %s907_s6 }
  0x28   : > { %p82_p9 = scmp.eq.s32.totalorder %s79_s12, 0  ;;  %s408_s13 = sshll.u32 %s618_s18, 8 }
  0x29   : > { %s759_s23 = scalar_lea.hbm %s881_s2, %s408_s13  ;;  %s167_s27 = scalar_lea.vmem [#allocation7], %s383_s11 }
  0x2a   : > { %s175_s28 = sshll.u32 %s167_s27, 4  ;;  %s768_s5 = scalar_lea.sflag [#allocation4], %s163_s8  ;;  %s766_s28 = int_to_ptr.vmem [resolvable:$true] %s175_s28 }
  0x2b   : > { %s764_s29 = scalar_select %p82_p9, %s610_s16, %s84_s21  }
  0x2c   : > { %s506_s7 = scalar_lea.hbm %s759_s23, 256  ;;  %p508_p13 = pneg %p729_p2 }
  0x2d   : > { %p507_p8 = scmp.ne.s32.totalorder %s759_s23, %s506_s7  ;;  %s511_s11 = scalar_lea.hbm %s881_s2, 512 }
  0x2e   : > { %p512_p10 = scmp.lt.u32.totalorder %s759_s23, %s881_s2  ;;  %p513_p11 = scmp.lt.u32.totalorder %s511_s11, %s506_s7 }
  0x2f   : > { %p509_p4 = pnand %p508_p13, %p507_p8  ;;  %p515_p0 = scmp.lt.u32.totalorder %s506_s7, %s759_s23 }
  0x30   : > { %p514_p5 = por %p513_p11, %p512_p10 }
  0x31   : > { %p510_p6 = pneg %p509_p4 }
  0x32   : > { %p516_p1 = por %p515_p0, %p514_p5 }
  0x34   : > { %p517_p9 = pnand %p516_p1, %p510_p6 }
  0x36   : > { %520 = shalt.err (!%p517_p9)
}
  0x37   : > { %s521_s21 = scalar_lea.vmem %s766_s28, 256  ;;  %s625_s8 = smov [#allocation7]  }
  0x38   : > { %p522_p8 = scmp.ne.s32.totalorder %s766_s28, %s521_s21  ;;  %s526_s1 = sshll.u32 %s625_s8, 4  ;;  %s527_s1 = int_to_ptr.vmem [resolvable:$false] %s526_s1 }
  0x39   : > { %s528_s20 = scalar_lea.vmem %s527_s1, 512  ;;  %p529_p3 = scmp.lt.s32.totalorder %s766_s28, %s527_s1 }
  0x3a   : > { %p524_p4 = pnand %p522_p8, %p508_p13  ;;  %p530_p10 = scmp.lt.s32.totalorder %s528_s20, %s521_s21 }
  0x3c   : > { %p525_p7 = pneg %p524_p4  ;;  %p531_p11 = por %p530_p10, %p529_p3 }
  0x3e   : > { %p532_p5 = pnand %p531_p11, %p525_p7 }
  0x40   : > { %535 = shalt.err (!%p532_p5)
}
  0x41   : > { %s626_s27 = smov 64   ;;  %s627_s7 = smov 4  }
  0x42   : > { %425 = dma.hbm_to_vmem [thread:$0]  (!%p729_p2), %s759_s23, 256, %s766_s28, %s768_s5, %s626_s27, %s626_s27, %s627_s7  }
  0x43   : > { %187 = sbr.rel (%p719_p12) target bundleno = 142 (0x8e), region = 32  ;;  %p896_p13 = scmp.ne.s32.totalorder (!%p719_p12), %s887_s22, 0 }
  0x4a   : > { %589 = dma.done.wait (%p896_p13), [#allocation6], 16  }
  0x4b   : > { %591 = vsyncadd (%p896_p13), [#allocation6], 4294967280  ;;  %s803_s9 = sand.u32 1, %s606_s15   ;;  %p897_p3 = scmp.ne.s32.totalorder %s889_s24, 0 }
  0x4c   : > { %s388_s10 = sshll.u32 %s803_s9, 4  ;;  %s194_s11 = scalar_lea.sflag [#allocation4], %s803_s9 }
  0x4d   : > { %s809_s4 = scalar_lea.vmem [#allocation7], %s388_s10 }
  0x4e   : > { %593 = dma.done.wait (%p897_p3), %s194_s11, 256  }
  0x4f   : > { %595 = vsyncadd (%p897_p3), %s194_s11, 4294967040 }
  0x50   : > { %202 = sfence }
  0x51   : > { %s222_s22 = sld [smem:[#allocation3]]  ;;  %s391_s30 = sld [smem:[#allocation3 + $0x1]]  ;;  %v221_v0 = vld [vmem:[%s809_s4] sm:$0xf]  ;;  %v390_v1 = vld [vmem:[%s809_s4 + $0x4] sm:$0xf] }
  0x52   : > { %s393_s23 = sld [smem:[#allocation3 + $0x2]]  ;;  %s395_s28 = sld [smem:[#allocation3 + $0x3]]  ;;  %v392_v3 = vld [vmem:[%s809_s4 + $0x8] sm:$0xf]  ;;  %v394_v6 = vld [vmem:[%s809_s4 + $0xc] sm:$0xf] }
  0x53   : > { %s243_s5 = sld [smem:[#allocation2]]  ;;  %s220_s24 = scalar_lea.vmem [#allocation8], %s388_s10  ;;  %v397_v20 = vld [vmem:[%s809_s4 + $0x4] sm:$0xf]  ;;  %v399_v21 = vld [vmem:[%s809_s4 + $0x8] sm:$0xf] }
  0x54   : > { %s281_s12 = sshll.u32 %s220_s24, 4  ;;  %v401_v22 = vld [vmem:[%s809_s4 + $0xc] sm:$0xf]  ;;  %s409_s13 = sshll.u32 %s614_s17, 8  ;;  %s825_s12 = int_to_ptr.vmem [resolvable:$true] %s281_s12 }
  0x55   : > { %s830_s1 = scalar_lea.hbm %s882_s3, %s409_s13  ;;  %s267_s17 = scalar_lea.sflag [#allocation5], %s803_s9 }
  0x56   : > { %s536_s20 = scalar_lea.vmem %s825_s12, 256  ;;  %p898_p12 = scmp.ne.s32.totalorder %s890_s25, 0 }
  0x57   : > { %v223_v2 = vstv %s222_s22  ;;  %v228_v5 = vstv %s391_s30  ;;  %p537_p7 = scmp.ne.s32.totalorder %s825_s12, %s536_s20  ;;  %s628_s27 = smov [#allocation8]  }
  0x58   : > { %v224_v4 = vmul.f32 %v223_v2, %v221_v0  ;;  %v229_v7 = vmul.f32 %v390_v1, %v228_v5  ;;  %v234_v8 = vstv %s393_s23  ;;  %v240_v9 = vstv %s395_s28  ;;  %s540_s7 = sshll.u32 %s628_s27, 4  ;;  %s541_s7 = int_to_ptr.vmem [resolvable:$false] %s540_s7 }
  0x59   : > { %v235_v10 = vmul.f32 %v392_v3, %v234_v8  ;;  %v241_v12 = vmul.f32 %v394_v6, %v240_v9  ;;  %v244_v14 = vstv %s243_s5  ;;  %p538_p2 = pnand %p537_p7, %p898_p12  ;;  %s542_s10 = scalar_lea.vmem %s541_s7, 512 }
  0x5a   : > { %v230_v11 = vadd.f32 %v229_v7, %v224_v4  ;;  %p543_p0 = scmp.lt.s32.totalorder %s825_s12, %s541_s7  ;;  %p544_p1 = scmp.lt.s32.totalorder %s542_s10, %s536_s20 }
  0x5b   : > { %p539_p6 = pneg %p538_p2 }
  0x5c   : > { %v236_v13 = vadd.f32 %v235_v10, %v230_v11  ;;  %p545_p9 = por %p544_p1, %p543_p0 }
  0x5e   : > { %v242_v15 = vadd.f32 %v241_v12, %v236_v13  ;;  %p546_p8 = pnand %p545_p9, %p539_p6 }
  0x60   : > { %v245_v16 = vadd.f32 %v244_v14, %v242_v15 }
  0x62   : > { %v396_v17 = vmul.f32 -1.442695, %v245_v16 }
  0x64   : > { %487 = vpow2.f32 %v396_v17 }
  0x6e   : > { %v488_v18 = vpop.eup %487 }
  0x6f   : > { %v249_v19 = vadd.f32 1.0, %v488_v18 }
  0x71   : > { %489 = vrcp.f32 %v249_v19 }
  0x7b   : > { %v490_v23 = vpop.eup %489 }
  0x7c   : > { %v252_v24 = vmul.f32 %v490_v23, %v221_v0  ;;  %v255_v25 = vmul.f32 %v490_v23, %v397_v20  ;;  %v259_v26 = vmul.f32 %v490_v23, %v399_v21  ;;  %v263_v27 = vmul.f32 %v490_v23, %v401_v22 }
  0x7e   : > { %253 = vst [vmem:[%s220_s24] sm:$0xf] %v252_v24  ;;  %398 = vst [vmem:[%s220_s24 + $0x4] sm:$0xf] %v255_v25 }
  0x7f   : > { %400 = vst [vmem:[%s220_s24 + $0x8] sm:$0xf] %v259_v26  ;;  %402 = vst [vmem:[%s220_s24 + $0xc] sm:$0xf] %v263_v27 }
  0x80   : > { %549 = shalt.err (!%p546_p8)
}
  0x81   : > { %s550_s11 = scalar_lea.hbm %s830_s1, 256  ;;  %s554_s30 = scalar_lea.hbm %s882_s3, 512 }
  0x82   : > { %p551_p4 = scmp.ne.s32.totalorder %s830_s1, %s550_s11  ;;  %p555_p5 = scmp.lt.u32.totalorder %s830_s1, %s882_s3 }
  0x83   : > { %p556_p13 = scmp.lt.u32.totalorder %s554_s30, %s550_s11  ;;  %p558_p7 = scmp.lt.u32.totalorder %s550_s11, %s830_s1 }
  0x84   : > { %p552_p10 = pnand %p551_p4, %p898_p12 }
  0x85   : > { %p557_p3 = por %p556_p13, %p555_p5 }
  0x86   : > { %p553_p11 = pneg %p552_p10 }
  0x87   : > { %p559_p2 = por %p558_p7, %p557_p3 }
  0x89   : > { %p560_p6 = pnand %p559_p2, %p553_p11 }
  0x8b   : > { %563 = shalt.err (!%p560_p6)
}
  0x8c   : > { %s629_s5 = smov 64   ;;  %s630_s24 = smov 4  }
  0x8d   : > { %416 = dma.vmem_to_hbm [thread:$0]  (%p898_p12), %s825_s12, 256, %s830_s1, %s267_s17, %s629_s5, %s629_s5, %s630_s24  }
  0x8e PF: > { %s296_s13 = sand.u32 1, %s602_s14   ;;  %p899_p0 = scmp.ne.s32.totalorder %s891_s26, 0 }
  0x8f   : > { %p900_p1 = scmp.ge.s32.totalorder %s622_s19, 2  ;;  %s297_s21 = scalar_lea.sflag [#allocation5], %s296_s13 }
  0x91   : > { %p427_p9 = pnand %p900_p1, %p899_p0 }
  0x93   : > { %597 = dma.done.wait (!%p427_p9), %s297_s21, 256  }
  0x94   : > { %599 = vsyncadd (!%p427_p9), %s297_s21, 4294967040  ;;  %s21_s19 = sadd.s32 1, %s622_s19   ;;  %s901_s14 = smov %s606_s15 }
  0x95   : > { %p18_p8 = scmp.ge.s32.totalorder %s21_s19, 4   ;;  %s902_s15 = smov %s610_s16 }
  0x96   : > { %s903_s16 = smov %s764_s29  ;;  %s904_s17 = smov %s618_s18 }
  0x97   : > { %s905_s18 = smov %s907_s6  ;;  %20 = sbr.rel (!%p18_p8) target bundleno = 9 (0x9), region = 88 }
  0x9e   :  { %302 = vsyncpa [#allocation4], 1 }
  0x9f   :  { %304 = vsyncpa [#allocation4 + $0x1], 1 }
  0xa0   :  { %305 = vsyncpa [#allocation5], 1 }
  0xa1   :  { %307 = vsyncpa [#allocation5 + $0x1], 1 }
  0xa2   :  { %308 = vsyncpa [#allocation6], 1 }
  0xa3   :  { %310 = vsyncpa [#allocation6 + $0x1], 1 }

</bundles_post_ra>
